<compile_context>
chip_gen: v5e
topology: v5e:2x2
jax: 0.10.0
libtpu: 0.0.40
codegen_flags: <defaults>
</compile_context>

<pallas_src>
import functools

import jax
import jax.numpy as jnp
from jax.experimental import pallas as pl
from jax.experimental.pallas import tpu as pltpu


def _round_up(x, m):
    return (x + m - 1) // m * m


# --------------------------------------------------------------------------- #
# Kernel
# --------------------------------------------------------------------------- #
def _head_transform_kernel(x_ref, w_ref, b_ref, gamma_ref, beta_ref, o_ref, *, eps):
    # x_ref: (tm, H) activations in their original dtype (usually f32).  The bf16
    # cast happens here, hidden under the MXU, instead of as a separate XLA pass
    # in the wrapper (removes a full read+write HBM pass over the activations).
    x_bf16 = x_ref[...].astype(jnp.bfloat16)

    # Dense on the MXU: bf16 inputs, f32 accumulation. w_ref is pre-transposed so y = x @ w.
    h = jnp.dot(x_bf16, w_ref[...], preferred_element_type=jnp.float32)
    h = h + b_ref[...]

    # Exact erf GELU in f32 (matches HF ACT2FN["gelu"] used by bert-base-chinese).
    # TODO(synk): on v6e/v7x this erf+LN chain is VALU-slot-bound; a bf16 elementwise
    # or tanh-GELU (EUP) variant would be ~1.3-1.8x faster but breaks exact parity.
    h = 0.5 * h * (1.0 + jax.lax.erf(h * jnp.float32(0.7071067811865476)))

    # LayerNorm over the hidden dim; single-pass statistics with a non-negativity clamp.
    inv_n = jnp.float32(1.0 / h.shape[-1])
    mean = jnp.sum(h, axis=-1, keepdims=True) * inv_n
    mean_sq = jnp.sum(h * h, axis=-1, keepdims=True) * inv_n
    var = jnp.maximum(mean_sq - mean * mean, jnp.float32(0.0))
    normed = (h - mean) * jax.lax.rsqrt(var + jnp.float32(eps))
    o_ref[...] = (normed * gamma_ref[...] + beta_ref[...]).astype(o_ref.dtype)


# --------------------------------------------------------------------------- #
# One-time (cached) probe for single-buffered resident params.
# --------------------------------------------------------------------------- #
_BUFFERED_SINGLE_OK = None


def _single_buffer_supported():
    """Probe BlockSpec(pipeline_mode=pl.Buffered(1)) once per process and cache."""
    global _BUFFERED_SINGLE_OK
    if _BUFFERED_SINGLE_OK is None:
        try:
            def _probe(x_ref, c_ref, o_ref):
                o_ref[...] = x_ref[...] + c_ref[...]

            fn = pl.pallas_call(
                _probe,
                out_shape=jax.ShapeDtypeStruct((8, 128), jnp.float32),
                grid=(1,),
                in_specs=[
                    pl.BlockSpec((8, 128), lambda i: (0, 0)),
                    pl.BlockSpec((8, 128), lambda i: (0, 0),
                                 pipeline_mode=pl.Buffered(1)),
                ],
                out_specs=pl.BlockSpec((8, 128), lambda i: (0, 0)),
            )
            jax.block_until_ready(
                fn(jnp.zeros((8, 128), jnp.float32), jnp.ones((8, 128), jnp.float32)))
            _BUFFERED_SINGLE_OK = True
        except Exception:
            _BUFFERED_SINGLE_OK = False
    return _BUFFERED_SINGLE_OK


# --------------------------------------------------------------------------- #
# Tiling / call construction
# --------------------------------------------------------------------------- #
def _sublane_multiple(dtype):
    return {4: 8, 2: 16, 1: 32}.get(jnp.dtype(dtype).itemsize, 8)


def _choose_row_tile(n, row_tile, dtype):
    sub = _sublane_multiple(dtype)
    # Aim for >=4 grid steps (keeps both v7x TensorCores busy through the
    # "parallel" grid axis) but never drop below 128 rows unless N itself is
    # smaller; large tiles amortize the ~0.35 us per-grid-step overhead.
    target = _round_up(max((n + 3) // 4, 1), sub)
    tm = max(target, 128)
    tm = min(tm, max(_round_up(row_tile, sub), sub))
    tm = min(tm, _round_up(n, sub))
    if tm > n:
        tm = n  # single full block; block dim == array dim is always legal
    return max(tm, 1)


def _build_call(n, hidden, tm, eps, x_dtype, out_dtype, single_buffer):
    kernel = functools.partial(_head_transform_kernel, eps=eps)

    # Resident params (constant block index): single-buffer them when supported so
    # the HxH weight does not burn 2x its size in VMEM under default double-buffering.
    const_kwargs = {"pipeline_mode": pl.Buffered(1)} if single_buffer else {}

    def const_spec(shape):
        return pl.BlockSpec(shape, lambda i: (0, 0), **const_kwargs)

    x_item = jnp.dtype(x_dtype).itemsize
    o_item = jnp.dtype(out_dtype).itemsize
    p_bufs = 1 if single_buffer else 2
    work = (2 * tm * hidden * x_item            # x tile (double-buffered)
            + p_bufs * hidden * hidden * 2      # bf16 weight (resident)
            + p_bufs * 3 * hidden * 4           # bias / gamma / beta, f32
            + 2 * tm * hidden * o_item          # out tile (double-buffered)
            + tm * hidden * (4 + 2))            # f32 h intermediate + in-kernel bf16 copy
    # Explicit VMEM budget; cap keeps headroom under v7x's 64 MiB physical VMEM.
    vmem_limit = int(min(48 << 20, max(32 << 20, 2 * work)))

    return pl.pallas_call(
        kernel,
        out_shape=jax.ShapeDtypeStruct((n, hidden), out_dtype),
        grid=(pl.cdiv(n, tm),),                                   # partial trailing block OK
        in_specs=[
            pl.BlockSpec((tm, hidden), lambda i: (i, 0)),         # activations (orig dtype)
            const_spec((hidden, hidden)),                         # weight (bf16, resident)
            const_spec((1, hidden)),                              # dense bias (f32)
            const_spec((1, hidden)),                              # LN gamma (f32)
            const_spec((1, hidden)),                              # LN beta (f32)
        ],
        out_specs=pl.BlockSpec((tm, hidden), lambda i: (i, 0)),   # lane-dense output
        compiler_params=pltpu.CompilerParams(
            dimension_semantics=("parallel",),                    # shard rows across TCs
            vmem_limit_bytes=vmem_limit,
        ),
    )


@functools.partial(jax.jit, static_argnames=("eps", "row_tile", "single_buffer"))
def _apply(hidden_states, w_t, b2d, gamma2d, beta2d, *, eps, row_tile, single_buffer):
    orig_shape = hidden_states.shape
    H = orig_shape[-1]
    x2d = hidden_states.reshape(-1, H)
    n = x2d.shape[0]
    tm = _choose_row_tile(n, row_tile, x2d.dtype)
    fn = _build_call(n, H, tm, eps, x2d.dtype, hidden_states.dtype, single_buffer)
    out2d = fn(x2d, w_t, b2d, gamma2d, beta2d)
    return out2d.reshape(orig_shape)


# --------------------------------------------------------------------------- #
# Public API
# --------------------------------------------------------------------------- #
def make_bert_prediction_head_transform(w, b, gamma, beta, *, eps=1e-12, row_tile=512):
    """Prepare parameters once (transpose + bf16 cast) and return a jitted apply fn.

    w: [H, H] in PyTorch nn.Linear layout (out, in); b, gamma, beta: [H].
    """
    H = w.shape[0]
    w_t = jnp.asarray(w).T.astype(jnp.bfloat16)                   # y = x @ w_t
    b2d = jnp.asarray(b, jnp.float32).reshape(1, H)
    gamma2d = jnp.asarray(gamma, jnp.float32).reshape(1, H)
    beta2d = jnp.asarray(beta, jnp.float32).reshape(1, H)
    single_buffer = _single_buffer_supported()

    # TODO(synk): for H >= ~2048 add a K-dim grid axis (last, "arbitrary") with an f32
    # accumulator scratch and tile the output-N dim instead of keeping HxH resident
    # (v7x 64 MiB VMEM is the first scaling cliff for the resident-weight design).

    def apply(hidden_states):
        return _apply(hidden_states, w_t, b2d, gamma2d, beta2d,
                      eps=float(eps), row_tile=int(row_tile),
                      single_buffer=bool(single_buffer))

    return apply


def bert_prediction_head_transform(hidden_states, w, b, gamma, beta, *,
                                    eps=1e-12, row_tile=512):
    """One-shot convenience wrapper. In a real model use the factory above so the
    weight transpose/cast happens once, not per call."""
    return make_bert_prediction_head_transform(
        w, b, gamma, beta, eps=eps, row_tile=row_tile)(hidden_states)


# --------------------------------------------------------------------------- #
# Reference + self-test
# --------------------------------------------------------------------------- #
def _reference(hidden_states, w, b, gamma, beta, *, eps=1e-12, matmul_dtype=jnp.float32):
    x = hidden_states.reshape(-1, hidden_states.shape[-1])
    h = jnp.dot(x.astype(matmul_dtype), w.T.astype(matmul_dtype),
                preferred_element_type=jnp.float32) + b.astype(jnp.float32)
    h = 0.5 * h * (1.0 + jax.lax.erf(h / jnp.sqrt(jnp.float32(2.0))))
    mean = jnp.mean(h, axis=-1, keepdims=True)
    var = jnp.mean((h - mean) ** 2, axis=-1, keepdims=True)
    h = (h - mean) * jax.lax.rsqrt(var + jnp.float32(eps))
    return (h * gamma + beta).reshape(hidden_states.shape)


if __name__ == "__main__":
    # Small lane-friendly stand-in for BERT's hidden=768; semantics identical.
    B, S, H = 2, 8, 256
    eps = 1e-12

    key = jax.random.PRNGKey(0)
    k_x, k_w, k_b, k_g, k_bt = jax.random.split(key, 5)

    x = jax.random.normal(k_x, (B, S, H), dtype=jnp.float32)
    w = jax.random.normal(k_w, (H, H), dtype=jnp.float32) * 0.02       # dense.weight [out, in]
    b = jax.random.normal(k_b, (H,), dtype=jnp.float32) * 0.02         # dense.bias
    gamma = 1.0 + 0.01 * jax.random.normal(k_g, (H,), dtype=jnp.float32)   # LayerNorm.weight
    beta = 0.01 * jax.random.normal(k_bt, (H,), dtype=jnp.float32)          # LayerNorm.bias

    transform = make_bert_prediction_head_transform(w, b, gamma, beta, eps=eps)
    out = jax.block_until_ready(transform(x))
    assert out.shape == (B, S, H)

    # Primary check: reference with the same bf16 matmul inputs / f32 accumulation.
    ref_bf16 = _reference(x, w, b, gamma, beta, eps=eps, matmul_dtype=jnp.bfloat16)
    assert jnp.allclose(out, ref_bf16, atol=2e-3, rtol=2e-3), "mismatch vs bf16-matmul reference"

    # Coarse sanity vs the full-f32 reference (bf16 input rounding dominates the gap).
    ref_f32 = _reference(x, w, b, gamma, beta, eps=eps, matmul_dtype=jnp.float32)
    assert jnp.allclose(out, ref_f32, atol=1e-1, rtol=1e-1), "mismatch vs f32 reference"

    # Second shape: ragged N with no jnp.pad -> multi-tile grid + partial trailing block
    # (N = 26, tm = 16 -> grid of 2 steps, trailing block of 10 valid rows).
    B2, S2 = 2, 13
    x2 = jax.random.normal(jax.random.PRNGKey(1), (B2, S2, H), dtype=jnp.float32)
    transform_small = make_bert_prediction_head_transform(w, b, gamma, beta,
                                                          eps=eps, row_tile=16)
    out2 = jax.block_until_ready(transform_small(x2))
    ref2 = _reference(x2, w, b, gamma, beta, eps=eps, matmul_dtype=jnp.bfloat16)
    assert out2.shape == (B2, S2, H)
    assert jnp.allclose(out2, ref2, atol=2e-3, rtol=2e-3), "mismatch on ragged/multi-tile shape"

    print("KERNEL_OK")
</pallas_src>

<mosaic_0001>
module attributes {stable_mosaic.version = 11 : i64} {
  func.func @_probe(%arg0: i32, %arg1: memref<8x128xf32, #tpu.memory_space<vmem>>, %arg2: memref<8x128xf32, #tpu.memory_space<vmem>>, %arg3: memref<8x128xf32, #tpu.memory_space<vmem>>) attributes {dimension_semantics = [#tpu.dimension_semantics<arbitrary>], iteration_bounds = array<i64: 1>, scalar_prefetch = 0 : i64, scratch_operands = 0 : i64, tpu.core_type = #tpu.core_type<tc>, window_params = [{pipeline_mode = #tpu.pipeline_mode<synchronous>, transform_indices = @transform_0, window_bounds = array<i64: 8, 128>}, {pipeline_mode = #tpu.pipeline_mode<synchronous>, transform_indices = @transform_1, window_bounds = array<i64: 8, 128>}, {pipeline_mode = #tpu.pipeline_mode<synchronous>, transform_indices = @transform_2, window_bounds = array<i64: 8, 128>}]} {
    %c0 = arith.constant 0 : index
    %c0_0 = arith.constant 0 : index
    %0 = vector.load %arg1[%c0, %c0_0] : memref<8x128xf32, #tpu.memory_space<vmem>>, vector<8x128xf32>
    %c0_1 = arith.constant 0 : index
    %c0_2 = arith.constant 0 : index
    %1 = vector.load %arg2[%c0_1, %c0_2] : memref<8x128xf32, #tpu.memory_space<vmem>>, vector<8x128xf32>
    %2 = arith.addf %0, %1 : vector<8x128xf32>
    %c0_3 = arith.constant 0 : index
    %c0_4 = arith.constant 0 : index
    %3 = vector.load %arg3[%c0_3, %c0_4] : memref<8x128xf32, #tpu.memory_space<vmem>>, vector<8x128xf32>
    tpu.vector_store %arg3[%c0_3, %c0_4], %2 {strides = array<i32>} : memref<8x128xf32, #tpu.memory_space<vmem>>, vector<8x128xf32>,
    return
  }
  func.func @transform_0(%arg0: i32) -> (i32, i32) {
    %c0_i32 = arith.constant 0 : i32
    %c0_i32_0 = arith.constant 0 : i32
    %c0_i32_1 = arith.constant 0 : i32
    return %c0_i32, %c0_i32_0 : i32, i32
  }
  func.func @transform_1(%arg0: i32) -> (i32, i32) {
    %c0_i32 = arith.constant 0 : i32
    %c0_i32_0 = arith.constant 0 : i32
    %c0_i32_1 = arith.constant 0 : i32
    return %c0_i32, %c0_i32_0 : i32, i32
  }
  func.func @transform_2(%arg0: i32) -> (i32, i32) {
    %c0_i32 = arith.constant 0 : i32
    %c0_i32_0 = arith.constant 0 : i32
    %c0_i32_1 = arith.constant 0 : i32
    return %c0_i32, %c0_i32_0 : i32, i32
  }
}

module attributes {stable_mosaic.version = 11 : i64} {
  func.func @_head_transform_kernel(%arg0: i32, %arg1: memref<16x256xf32, #tpu.memory_space<vmem>>, %arg2: memref<256x256xbf16, #tpu.memory_space<vmem>>, %arg3: memref<1x256xf32, #tpu.memory_space<vmem>>, %arg4: memref<1x256xf32, #tpu.memory_space<vmem>>, %arg5: memref<1x256xf32, #tpu.memory_space<vmem>>, %arg6: memref<16x256xf32, #tpu.memory_space<vmem>>) attributes {dimension_semantics = [#tpu.dimension_semantics<parallel>], iteration_bounds = array<i64: 1>, scalar_prefetch = 0 : i64, scratch_operands = 0 : i64, tpu.core_type = #tpu.core_type<tc>, window_params = [{transform_indices = @transform_0, window_bounds = array<i64: 16, 256>}, {pipeline_mode = #tpu.pipeline_mode<synchronous>, transform_indices = @transform_1, window_bounds = array<i64: 256, 256>}, {pipeline_mode = #tpu.pipeline_mode<synchronous>, transform_indices = @transform_2, window_bounds = array<i64: 1, 256>}, {pipeline_mode = #tpu.pipeline_mode<synchronous>, transform_indices = @transform_3, window_bounds = array<i64: 1, 256>}, {pipeline_mode = #tpu.pipeline_mode<synchronous>, transform_indices = @transform_4, window_bounds = array<i64: 1, 256>}, {transform_indices = @transform_5, window_bounds = array<i64: 16, 256>}]} {
    %c0 = arith.constant 0 : index
    %c0_0 = arith.constant 0 : index
    %0 = vector.load %arg1[%c0, %c0_0] : memref<16x256xf32, #tpu.memory_space<vmem>>, vector<16x256xf32>
    %1 = arith.truncf %0 : vector<16x256xf32> to vector<16x256xbf16>
    %c0_1 = arith.constant 0 : index
    %c0_2 = arith.constant 0 : index
    %2 = vector.load %arg2[%c0_1, %c0_2] : memref<256x256xbf16, #tpu.memory_space<vmem>>, vector<256x256xbf16>
    %cst = arith.constant dense<0.000000e+00> : vector<16x256xf32>
    %3 = tpu.matmul %1, %2, %cst {dimension_numbers = #tpu.dot_dimension_numbers<[1], [0], [0], [1], [0, 0, 1, 1], [], []>} : vector<16x256xbf16>, vector<256x256xbf16>, vector<16x256xf32> -> vector<16x256xf32>
    %c0_3 = arith.constant 0 : index
    %c0_4 = arith.constant 0 : index
    %4 = vector.load %arg3[%c0_3, %c0_4] : memref<1x256xf32, #tpu.memory_space<vmem>>, vector<1x256xf32>
    %5 = vector.broadcast %4 : vector<1x256xf32> to vector<16x256xf32>
    %6 = arith.addf %3, %5 : vector<16x256xf32>
    %cst_5 = arith.constant 5.000000e-01 : f32
    %7 = vector.broadcast %cst_5 : f32 to vector<16x256xf32>
    %8 = arith.mulf %7, %6 : vector<16x256xf32>
    %cst_6 = arith.constant 0.707106769 : f32
    %9 = vector.broadcast %cst_6 : f32 to vector<16x256xf32>
    %10 = arith.mulf %6, %9 : vector<16x256xf32>
    %11 = math.erf %10 : vector<16x256xf32>
    %cst_7 = arith.constant 1.000000e+00 : f32
    %12 = vector.broadcast %cst_7 : f32 to vector<16x256xf32>
    %13 = arith.addf %12, %11 : vector<16x256xf32>
    %14 = arith.mulf %8, %13 : vector<16x256xf32>
    %cst_8 = arith.constant dense<0.000000e+00> : vector<16xf32>
    %15 = vector.multi_reduction <add>, %14, %cst_8 [1] : vector<16x256xf32> to vector<16xf32>
    %16 = vector.shape_cast %15 : vector<16xf32> to vector<16x1xf32>
    %cst_9 = arith.constant 3.906250e-03 : f32
    %17 = vector.broadcast %cst_9 : f32 to vector<16x1xf32>
    %18 = arith.mulf %16, %17 : vector<16x1xf32>
    %19 = arith.mulf %14, %14 : vector<16x256xf32>
    %cst_10 = arith.constant dense<0.000000e+00> : vector<16xf32>
    %20 = vector.multi_reduction <add>, %19, %cst_10 [1] : vector<16x256xf32> to vector<16xf32>
    %21 = vector.shape_cast %20 : vector<16xf32> to vector<16x1xf32>
    %cst_11 = arith.constant 3.906250e-03 : f32
    %22 = vector.broadcast %cst_11 : f32 to vector<16x1xf32>
    %23 = arith.mulf %21, %22 : vector<16x1xf32>
    %24 = arith.mulf %18, %18 : vector<16x1xf32>
    %25 = arith.subf %23, %24 : vector<16x1xf32>
    %cst_12 = arith.constant 0.000000e+00 : f32
    %26 = vector.broadcast %cst_12 : f32 to vector<16x1xf32>
    %27 = arith.maximumf %25, %26 : vector<16x1xf32>
    %28 = vector.broadcast %18 : vector<16x1xf32> to vector<16x256xf32>
    %29 = arith.subf %14, %28 : vector<16x256xf32>
    %cst_13 = arith.constant 9.99999996E-13 : f32
    %30 = vector.broadcast %cst_13 : f32 to vector<16x1xf32>
    %31 = arith.addf %27, %30 : vector<16x1xf32>
    %32 = math.rsqrt %31 : vector<16x1xf32>
    %33 = vector.broadcast %32 : vector<16x1xf32> to vector<16x256xf32>
    %34 = arith.mulf %29, %33 : vector<16x256xf32>
    %c0_14 = arith.constant 0 : index
    %c0_15 = arith.constant 0 : index
    %35 = vector.load %arg4[%c0_14, %c0_15] : memref<1x256xf32, #tpu.memory_space<vmem>>, vector<1x256xf32>
    %36 = vector.broadcast %35 : vector<1x256xf32> to vector<16x256xf32>
    %37 = arith.mulf %34, %36 : vector<16x256xf32>
    %c0_16 = arith.constant 0 : index
    %c0_17 = arith.constant 0 : index
    %38 = vector.load %arg5[%c0_16, %c0_17] : memref<1x256xf32, #tpu.memory_space<vmem>>, vector<1x256xf32>
    %39 = vector.broadcast %38 : vector<1x256xf32> to vector<16x256xf32>
    %40 = arith.addf %37, %39 : vector<16x256xf32>
    %c0_18 = arith.constant 0 : index
    %c0_19 = arith.constant 0 : index
    %41 = vector.load %arg6[%c0_18, %c0_19] : memref<16x256xf32, #tpu.memory_space<vmem>>, vector<16x256xf32>
    tpu.vector_store %arg6[%c0_18, %c0_19], %40 {strides = array<i32>} : memref<16x256xf32, #tpu.memory_space<vmem>>, vector<16x256xf32>,
    return
  }
  func.func @transform_0(%arg0: i32) -> (i32, i32) {
    %c0_i32 = arith.constant 0 : i32
    %c0_i32_0 = arith.constant 0 : i32
    return %arg0, %c0_i32 : i32, i32
  }
  func.func @transform_1(%arg0: i32) -> (i32, i32) {
    %c0_i32 = arith.constant 0 : i32
    %c0_i32_0 = arith.constant 0 : i32
    %c0_i32_1 = arith.constant 0 : i32
    return %c0_i32, %c0_i32_0 : i32, i32
  }
  func.func @transform_2(%arg0: i32) -> (i32, i32) {
    %c0_i32 = arith.constant 0 : i32
    %c0_i32_0 = arith.constant 0 : i32
    %c0_i32_1 = arith.constant 0 : i32
    return %c0_i32, %c0_i32_0 : i32, i32
  }
  func.func @transform_3(%arg0: i32) -> (i32, i32) {
    %c0_i32 = arith.constant 0 : i32
    %c0_i32_0 = arith.constant 0 : i32
    %c0_i32_1 = arith.constant 0 : i32
    return %c0_i32, %c0_i32_0 : i32, i32
  }
  func.func @transform_4(%arg0: i32) -> (i32, i32) {
    %c0_i32 = arith.constant 0 : i32
    %c0_i32_0 = arith.constant 0 : i32
    %c0_i32_1 = arith.constant 0 : i32
    return %c0_i32, %c0_i32_0 : i32, i32
  }
  func.func @transform_5(%arg0: i32) -> (i32, i32) {
    %c0_i32 = arith.constant 0 : i32
    %c0_i32_0 = arith.constant 0 : i32
    return %arg0, %c0_i32 : i32, i32
  }
}

</mosaic_0001>

<bundles_post_ra>
// kernel: tpu_custom_call.1
= control target key start
LH: loop header
LB: loop body
LE: loop exit
PB: predicated region body
PF: predicated region fallthrough
CT: control target
= control target key end

     0   :  { %7 = vsyncpa [#allocation3], 0  ;;  %s170_s0 = inlined_call_operand.hbm [shape: f32[8,128], index: 0, kind: input, shape index: {}]   ;;  %s171_s1 = inlined_call_operand.hbm [shape: f32[8,128], index: 1, kind: input, shape index: {}]   ;;  %s172_s2 = inlined_call_operand.hbm [shape: f32[8,128], index: 2, kind: output, shape index: {}]  }
   0x1   :  { %8 = vsyncpa [#allocation6], 0 }
   0x2   :  { %9 = vsyncpa [#allocation4], 0  ;;  %s15_s11 = sshll.u32 %s170_s0, 4  ;;  %s143_s12 = smov [#allocation2]   ;;  %s16_s11 = int_to_ptr.hbm [resolvable:$true] %s15_s11 }
   0x3   :  { %s17_s13 = sshll.u32 %s143_s12, 4  ;;  %s26_s16 = sshll.u32 %s171_s1, 4  ;;  %s18_s13 = int_to_ptr.vmem [resolvable:$true] %s17_s13  ;;  %s27_s16 = int_to_ptr.hbm [resolvable:$true] %s26_s16 }
   0x4   :  { %20 = dma.hbm_to_vmem [thread:$0]  %s16_s11, 128, %s18_s13, [#allocation3]  }
   0x5   :  { %s144_s17 = smov [#allocation5]  }
   0x6   :  { %s28_s18 = sshll.u32 %s144_s17, 4  ;;  %s29_s18 = int_to_ptr.vmem [resolvable:$true] %s28_s18 }
   0x7   :  { %31 = dma.hbm_to_vmem [thread:$0]  %s27_s16, 128, %s29_s18, [#allocation6]  }
   0x8   :  { %137 = dma.done.wait [#allocation3], 128  }
   0x9   :  { %138 = vsyncadd [#allocation3], 4294967168 }
   0xa   :  { %139 = dma.done.wait [#allocation6], 128  }
   0xb   :  { %140 = vsyncadd [#allocation6], 4294967168  ;;  %s145_s19 = smov [#allocation7]   ;;  %s51_s22 = sshll.u32 %s172_s2, 4  ;;  %v40_v0 = vld [vmem:[#allocation2] sm:$0xff]  ;;  %v41_v1 = vld [vmem:[#allocation5] sm:$0xff]  ;;  %s52_s22 = int_to_ptr.hbm [resolvable:$true] %s51_s22 }
   0xc   :  { %s49_s0 = sshll.u32 %s145_s19, 4  ;;  %v42_v2 = vadd.f32 %v41_v1, %v40_v0  ;;  %s50_s0 = int_to_ptr.vmem [resolvable:$true] %s49_s0 }
   0xe   :  { %43 = vst [vmem:[#allocation7] sm:$0xff] %v42_v2 }
   0xf   :  { %54 = dma.vmem_to_hbm [thread:$0]  %s50_s0, 128, %s52_s22, [#allocation4]  }
  0x10   :  { %141 = dma.done.wait [#allocation4], 128  }
  0x11   :  { %142 = vsyncadd [#allocation4], 4294967168 }
  0x12   :  { %59 = vsyncpa [#allocation3], 1 }
  0x13   :  { %60 = vsyncpa [#allocation6], 1 }
  0x14   :  { %61 = vsyncpa [#allocation4], 1 }

// kernel: _apply.1
= control target key start
LH: loop header
LB: loop body
LE: loop exit
PB: predicated region body
PF: predicated region fallthrough
CT: control target
= control target key end

     0   :  { %10 = vsyncpa [#allocation3], 0  ;;  %s1065_s0 = inlined_call_operand.hbm [shape: f32[16,256], index: 0, kind: input, shape index: {}]   ;;  %s1066_s1 = inlined_call_operand.hbm [shape: bf16[256,256], index: 1, kind: input, shape index: {}]   ;;  %s1067_s2 = inlined_call_operand.vmem [shape: f32[1,256], index: 2, kind: input, shape index: {}]   ;;  %s1068_s3 = inlined_call_operand.hbm [shape: f32[1,256], index: 3, kind: input, shape index: {}]   ;;  %s1069_s4 = inlined_call_operand.vmem [shape: f32[1,256], index: 4, kind: input, shape index: {}]   ;;  %s1070_s5 = inlined_call_operand.hbm [shape: f32[16,256], index: 5, kind: output, shape index: {}]  }
   0x1   :  { %11 = vsyncpa [#allocation6], 0  ;;  %s30_s20 = sshll.u32 %s1066_s1, 4  ;;  %s31_s20 = int_to_ptr.hbm [resolvable:$true] %s30_s20 }
   0x2   :  { %12 = vsyncpa [#allocation4], 0  ;;  %s888_s21 = smov [#allocation5]   ;;  %s17_s25 = sshll.u32 %s1065_s0, 4  ;;  %s18_s25 = int_to_ptr.hbm [resolvable:$true] %s17_s25 }
   0x3   :  { %s32_s22 = sshll.u32 %s888_s21, 4  ;;  %s889_s26 = smov 128   ;;  %s33_s22 = int_to_ptr.vmem [resolvable:$true] %s32_s22 }
   0x4   :  { %s890_s27 = smov 8   ;;  %s891_s28 = smov [#allocation2]  }
   0x5   :  { %38 = dma.hbm_to_vmem [thread:$0]  %s31_s20, 4096, %s33_s22, [#allocation6], %s889_s26, %s889_s26, %s890_s27  }
   0x6   :  { %s19_s29 = sshll.u32 %s891_s28, 4  ;;  %s892_s30 = smov 256   ;;  %s20_s29 = int_to_ptr.vmem [resolvable:$true] %s19_s29 }
   0x7   :  { %s893_s6 = smov 16   ;;  %s46_s8 = sshll.u32 %s1068_s3, 4  ;;  %s47_s8 = int_to_ptr.hbm [resolvable:$true] %s46_s8 }
   0x8   :  { %25 = dma.hbm_to_vmem [thread:$0]  %s18_s25, 512, %s20_s29, [#allocation3], %s892_s30, %s892_s30, %s893_s6  }
   0x9   :  { %s894_s9 = smov [#allocation7]  }
   0xa   :  { %s48_s0 = sshll.u32 %s894_s9, 4  ;;  %s49_s0 = int_to_ptr.vmem [resolvable:$true] %s48_s0 }
   0xb   :  { %51 = dma.hbm_to_vmem [thread:$0]  %s47_s8, 32, %s49_s0, [#allocation6]  }
   0xc   :  { %882 = dma.done.wait [#allocation3], 512  }
   0xd   :  { %883 = vsyncadd [#allocation3], 4294966784 }
   0xe   :  { %884 = dma.done.wait [#allocation6], 4128  }
   0xf   :  { %885 = vsyncadd [#allocation6], 4294963168  ;;  %v660_v0 = vld [vmem:[#allocation5 + $0x70] sm:$0xf]  ;;  %v749_v1 = vld [vmem:[#allocation5 + $0x74] sm:$0xf0] }
  0x10   :  { %v724_v2 = vld [vmem:[#allocation5 + $0xf0] sm:$0xf]  ;;  %v661_v3 = vor.u32 %v749_v1, %v660_v0  ;;  %v765_v4 = vld [vmem:[#allocation5 + $0xf4] sm:$0xf0]  ;;  %v748_v5 = vld [vmem:[#allocation5 + $0x74] sm:$0xf] }
  0x11   :  { %v662_v6 = vld [vmem:[#allocation5 + $0x78] sm:$0xf0]  ;;  %v725_v7 = vor.u32 %v765_v4, %v724_v2  ;;  %v764_v9 = vld [vmem:[#allocation5 + $0xf4] sm:$0xf]  ;;  %v652_v11 = vld [vmem:[#allocation5 + $0x60] sm:$0xf] }
  0x12   :  { %v665_v8 = vor.u32 %v748_v5, %v662_v6  ;;  %v726_v10 = vld [vmem:[#allocation5 + $0xf8] sm:$0xf0]  ;;  %270 = vmatpush.bf16.msra.mxu0 %v661_v3  ;;  %v747_v13 = vld [vmem:[#allocation5 + $0x64] sm:$0xf0]  ;;  %v716_v14 = vld [vmem:[#allocation5 + $0xe0] sm:$0xf] }
  0x13   :  { %v729_v12 = vor.u32 %v764_v9, %v726_v10  ;;  %v763_v15 = vld [vmem:[#allocation5 + $0xe4] sm:$0xf0]  ;;  %284 = vmatpush.bf16.msra.mxu1 %v725_v7  ;;  %v653_v16 = vor.u32 %v747_v13, %v652_v11  ;;  %v746_v18 = vld [vmem:[#allocation5 + $0x64] sm:$0xf]  ;;  %v654_v19 = vld [vmem:[#allocation5 + $0x68] sm:$0xf0] }
  0x14   :  { %298 = vmatpush.bf16.msra.mxu2 %v665_v8  ;;  %v717_v17 = vor.u32 %v763_v15, %v716_v14  ;;  %v762_v20 = vld [vmem:[#allocation5 + $0xe4] sm:$0xf]  ;;  %v657_v21 = vor.u32 %v746_v18, %v654_v19  ;;  %v718_v22 = vld [vmem:[#allocation5 + $0xe8] sm:$0xf0]  ;;  %v644_v23 = vld [vmem:[#allocation5 + $0x50] sm:$0xf] }
  0x15   :  { %312 = vmatpush.bf16.msra.mxu3 %v729_v12  ;;  %v745_v24 = vld [vmem:[#allocation5 + $0x54] sm:$0xf0]  ;;  %v721_v25 = vor.u32 %v762_v20, %v718_v22  ;;  %v708_v26 = vld [vmem:[#allocation5 + $0xd0] sm:$0xf]  ;;  %v744_v28 = vld [vmem:[#allocation5 + $0x54] sm:$0xf] }
  0x16   :  { %v761_v27 = vld [vmem:[#allocation5 + $0xd4] sm:$0xf0]  ;;  %271 = vmatpush.bf16.msra.mxu0 %v653_v16  ;;  %v645_v29 = vor.u32 %v745_v24, %v644_v23  ;;  %v646_v30 = vld [vmem:[#allocation5 + $0x58] sm:$0xf0]  ;;  %v760_v31 = vld [vmem:[#allocation5 + $0xd4] sm:$0xf] }
  0x17   :  { %v710_v32 = vld [vmem:[#allocation5 + $0xd8] sm:$0xf0]  ;;  %285 = vmatpush.bf16.msra.mxu1 %v717_v17  ;;  %v709_v33 = vor.u32 %v761_v27, %v708_v26  ;;  %v649_v34 = vor.u32 %v744_v28, %v646_v30  ;;  %v636_v35 = vld [vmem:[#allocation5 + $0x40] sm:$0xf]  ;;  %v743_v36 = vld [vmem:[#allocation5 + $0x44] sm:$0xf0] }
  0x18   :  { %299 = vmatpush.bf16.msra.mxu2 %v657_v21  ;;  %v700_v37 = vld [vmem:[#allocation5 + $0xc0] sm:$0xf]  ;;  %v713_v38 = vor.u32 %v760_v31, %v710_v32  ;;  %v759_v39 = vld [vmem:[#allocation5 + $0xc4] sm:$0xf0]  ;;  %v742_v40 = vld [vmem:[#allocation5 + $0x44] sm:$0xf]  ;;  %v637_v44 = vor.u32 %v743_v36, %v636_v35 }
  0x19   :  { %313 = vmatpush.bf16.msra.mxu3 %v721_v25  ;;  %v638_v41 = vld [vmem:[#allocation5 + $0x48] sm:$0xf0]  ;;  %v758_v42 = vld [vmem:[#allocation5 + $0xc4] sm:$0xf]  ;;  %v701_v45 = vor.u32 %v759_v39, %v700_v37  ;;  %v628_v47 = vld [vmem:[#allocation5 + $0x30] sm:$0xf] }
  0x1a   :  { %v702_v43 = vld [vmem:[#allocation5 + $0xc8] sm:$0xf0]  ;;  %272 = vmatpush.bf16.msra.mxu0 %v645_v29  ;;  %v641_v46 = vor.u32 %v742_v40, %v638_v41  ;;  %v741_v48 = vld [vmem:[#allocation5 + $0x34] sm:$0xf0]  ;;  %v692_v49 = vld [vmem:[#allocation5 + $0xb0] sm:$0xf] }
  0x1b   :  { %286 = vmatpush.bf16.msra.mxu1 %v709_v33  ;;  %v705_v50 = vor.u32 %v758_v42, %v702_v43  ;;  %v757_v51 = vld [vmem:[#allocation5 + $0xb4] sm:$0xf0]  ;;  %v740_v52 = vld [vmem:[#allocation5 + $0x34] sm:$0xf]  ;;  %v630_v53 = vld [vmem:[#allocation5 + $0x38] sm:$0xf0]  ;;  %v629_v56 = vor.u32 %v741_v48, %v628_v47 }
  0x1c   :  { %300 = vmatpush.bf16.msra.mxu2 %v649_v34  ;;  %v756_v54 = vld [vmem:[#allocation5 + $0xb4] sm:$0xf]  ;;  %v694_v55 = vld [vmem:[#allocation5 + $0xb8] sm:$0xf0]  ;;  %v693_v57 = vor.u32 %v757_v51, %v692_v49  ;;  %v633_v58 = vor.u32 %v740_v52, %v630_v53  ;;  %v620_v59 = vld [vmem:[#allocation5 + $0x20] sm:$0xf] }
  0x1d   :  { %314 = vmatpush.bf16.msra.mxu3 %v713_v38  ;;  %v739_v60 = vld [vmem:[#allocation5 + $0x24] sm:$0xf0]  ;;  %v684_v61 = vld [vmem:[#allocation5 + $0xa0] sm:$0xf]  ;;  %v697_v62 = vor.u32 %v756_v54, %v694_v55  ;;  %v738_v0 = vld [vmem:[#allocation5 + $0x24] sm:$0xf] }
  0x1e   :  { %273 = vmatpush.bf16.msra.mxu0 %v637_v44  ;;  %v755_v63 = vld [vmem:[#allocation5 + $0xa4] sm:$0xf0]  ;;  %v622_v1 = vld [vmem:[#allocation5 + $0x28] sm:$0xf0]  ;;  %v754_v2 = vld [vmem:[#allocation5 + $0xa4] sm:$0xf]  ;;  %v621_v4 = vor.u32 %v739_v60, %v620_v59 }
  0x1f   :  { %287 = vmatpush.bf16.msra.mxu1 %v701_v45  ;;  %v686_v3 = vld [vmem:[#allocation5 + $0xa8] sm:$0xf0]  ;;  %v685_v5 = vor.u32 %v755_v63, %v684_v61  ;;  %v625_v6 = vor.u32 %v738_v0, %v622_v1  ;;  %v612_v7 = vld [vmem:[#allocation5 + $0x10] sm:$0xf]  ;;  %v737_v8 = vld [vmem:[#allocation5 + $0x14] sm:$0xf0] }
  0x20   :  { %301 = vmatpush.bf16.msra.mxu2 %v641_v46  ;;  %v676_v9 = vld [vmem:[#allocation5 + $0x90] sm:$0xf]  ;;  %v689_v10 = vor.u32 %v754_v2, %v686_v3  ;;  %v753_v11 = vld [vmem:[#allocation5 + $0x94] sm:$0xf0]  ;;  %v736_v12 = vld [vmem:[#allocation5 + $0x14] sm:$0xf]  ;;  %v613_v16 = vor.u32 %v737_v8, %v612_v7 }
  0x21   :  { %315 = vmatpush.bf16.msra.mxu3 %v705_v50  ;;  %v614_v13 = vld [vmem:[#allocation5 + $0x18] sm:$0xf0]  ;;  %v752_v14 = vld [vmem:[#allocation5 + $0x94] sm:$0xf]  ;;  %v677_v17 = vor.u32 %v753_v11, %v676_v9  ;;  %v604_v19 = vld [vmem:[#allocation5] sm:$0xf] }
  0x22   :  { %274 = vmatpush.bf16.msra.mxu0 %v629_v56  ;;  %v678_v15 = vld [vmem:[#allocation5 + $0x98] sm:$0xf0]  ;;  %v617_v18 = vor.u32 %v736_v12, %v614_v13  ;;  %v735_v20 = vld [vmem:[#allocation5 + $0x4] sm:$0xf0]  ;;  %v668_v21 = vld [vmem:[#allocation5 + $0x80] sm:$0xf] }
  0x23   :  { %288 = vmatpush.bf16.msra.mxu1 %v693_v57  ;;  %v681_v22 = vor.u32 %v752_v14, %v678_v15  ;;  %v751_v23 = vld [vmem:[#allocation5 + $0x84] sm:$0xf0]  ;;  %v734_v24 = vld [vmem:[#allocation5 + $0x4] sm:$0xf]  ;;  %v606_v25 = vld [vmem:[#allocation5 + $0x8] sm:$0xf0]  ;;  %v605_v28 = vor.u32 %v735_v20, %v604_v19 }
  0x24   :  { %302 = vmatpush.bf16.msra.mxu2 %v633_v58  ;;  %v750_v26 = vld [vmem:[#allocation5 + $0x84] sm:$0xf]  ;;  %v670_v27 = vld [vmem:[#allocation5 + $0x88] sm:$0xf0]  ;;  %v68_v30 = vld [vmem:[#allocation2 + $0x10] sm:$0xff]  ;;  %v669_v31 = vor.u32 %v751_v23, %v668_v21  ;;  %v609_v32 = vor.u32 %v734_v24, %v606_v25  ;;  %s588_s15 = sshll.u32 %s1070_s5, 4  ;;  %s589_s15 = int_to_ptr.hbm [resolvable:$true] %s588_s15 }
  0x25   :  { %316 = vmatpush.bf16.msra.mxu3 %v697_v62  ;;  %v66_v29 = vld [vmem:[#allocation2] sm:$0xff]  ;;  %v67_v33 = vld [vmem:[#allocation2 + $0x8] sm:$0xff]  ;;  %v69_v34 = vld [vmem:[#allocation2 + $0x18] sm:$0xff]  ;;  %v673_v35 = vor.u32 %v750_v26, %v670_v27 }
  0x26   :  { %275 = vmatpush.bf16.msra.mxu0 %v621_v4  ;;  %v70_v36 = vpack.c.bf16 %v68_v30, %v66_v29  ;;  %v71_v37 = vpack.c.bf16 %v69_v34, %v67_v33  ;;  %v104_v38 = vld [vmem:[%s1067_s2] sm:$0x3] }
  0x27   :  { %289 = vmatpush.bf16.msra.mxu1 %v685_v5  ;;  %v106_v39 = vperm.slane %v104_v38, 0  ;;  %v107_v44 = vperm.slane %v104_v38, 1 }
  0x28   :  { %303 = vmatpush.bf16.msra.mxu2 %v625_v6 }
  0x29   :  { %317 = vmatpush.bf16.msra.mxu3 %v689_v10 }
  0x2a   :  { %276 = vmatpush.bf16.msra.mxu0 %v613_v16 }
  0x2b   :  { %290 = vmatpush.bf16.msra.mxu1 %v677_v17 }
  0x2c   :  { %304 = vmatpush.bf16.msra.mxu2 %v617_v18 }
  0x2d   :  { %318 = vmatpush.bf16.msra.mxu3 %v681_v22 }
  0x2e   :  { %277 = vmatpush.bf16.msra.mxu0 %v605_v28 }
  0x2f   :  { %291 = vmatpush.bf16.msra.mxu1 %v669_v31 }
  0x30   :  { %305 = vmatpush.bf16.msra.mxu2 %v609_v32 }
  0x31   :  { %319 = vmatpush.bf16.msra.mxu3 %v673_v35  ;;  %278 = vmatmul.bf16.vlgmr.msra.gmra.mxu0 %v70_v36 }
  0x32   :  { %292 = vmatmul.bf16.vlgmr.msra.gmra.mxu1 %v71_v37 }
  0x33   :  { %306 = vmatmul.bf16.vlgmr.msra.gmra.mxu2 %v70_v36 }
  0x34   :  { %320 = vmatmul.bf16.vlgmr.msra.gmra.mxu3 %v71_v37 }
  0xae   :  { %v279_v40 = vpop.f32.mrf.mxu0 }
  0xaf   :  { %v280_v41 = vadd.f32 %v279_v40, %v106_v39  ;;  %v293_v42 = vpop.f32.mrf.mxu1 }
  0xb1   :  { %v941_v43 = vadd.f32 %v293_v42, %v280_v41 }
  0xb3   :  { %v944_v45 = vmul.f32 0.70710677, %v941_v43 }
  0xb5   :  { %v334_v46 = vmul.f32 %v944_v45, %v944_v45 }
  0xb6   :  { %v307_v47 = vpop.f32.mrf.mxu2  ;;  %v281_v50 = vpop.f32.mrf.mxu0 }
  0xb7   :  { %v308_v48 = vadd.f32 %v307_v47, %v107_v44  ;;  %v321_v49 = vpop.f32.mrf.mxu3  ;;  %v948_v51 = vmin.f32 %v334_v46, 16.0  ;;  %v282_v52 = vadd.f32 %v281_v50, %v106_v39  ;;  %v295_v54 = vpop.f32.mrf.mxu1 }
  0xb9   :  { %v950_v53 = vadd.f32 %v321_v49, %v308_v48  ;;  %v336_v55 = vmul.f32 2.1237322e-06, %v948_v51  ;;  %v347_v56 = vmul.f32 3.8918573e-05, %v948_v51  ;;  %v954_v57 = vadd.f32 %v295_v54, %v282_v52 }
  0xbb   :  { %v957_v58 = vmul.f32 0.70710677, %v950_v53  ;;  %v337_v59 = vadd.f32 0.00028619796, %v336_v55  ;;  %v348_v60 = vadd.f32 0.001143296, %v347_v56 }
  0xbc   :  { %v962_v62 = vmul.f32 0.70710677, %v954_v57 }
  0xbd   :  { %v374_v61 = vmul.f32 %v957_v58, %v957_v58  ;;  %v338_v63 = vmul.f32 %v337_v59, %v948_v51  ;;  %v349_v0 = vmul.f32 %v348_v60, %v948_v51 }
  0xbe   :  { %v309_v1 = vpop.f32.mrf.mxu2  ;;  %v414_v3 = vmul.f32 %v962_v62, %v962_v62 }
  0xbf   :  { %v966_v2 = vmin.f32 %v374_v61, 16.0  ;;  %v310_v4 = vadd.f32 %v309_v1, %v107_v44  ;;  %v339_v5 = vadd.f32 0.0036580483, %v338_v63  ;;  %v350_v6 = vadd.f32 0.014752088, %v349_v0  ;;  %v323_v10 = vpop.f32.mrf.mxu3 }
  0xc0   :  { %v972_v9 = vmin.f32 %v414_v3, 16.0 }
  0xc1   :  { %v376_v7 = vmul.f32 2.1237322e-06, %v966_v2  ;;  %v387_v8 = vmul.f32 3.8918573e-05, %v966_v2  ;;  %v340_v11 = vmul.f32 %v339_v5, %v948_v51  ;;  %v351_v12 = vmul.f32 %v350_v6, %v948_v51 }
  0xc2   :  { %v976_v13 = vadd.f32 %v323_v10, %v310_v4  ;;  %v416_v16 = vmul.f32 2.1237322e-06, %v972_v9  ;;  %v427_v18 = vmul.f32 3.8918573e-05, %v972_v9 }
  0xc3   :  { %v377_v14 = vadd.f32 0.00028619796, %v376_v7  ;;  %v388_v15 = vadd.f32 0.001143296, %v387_v8  ;;  %v352_v17 = vadd.f32 0.112945676, %v351_v12 }
  0xc4   :  { %v341_v21 = vadd.f32 0.05243302, %v340_v11  ;;  %v428_v23 = vadd.f32 0.001143296, %v427_v18  ;;  %v984_v24 = vmul.f32 0.70710677, %v976_v13 }
  0xc5   :  { %v378_v19 = vmul.f32 %v377_v14, %v966_v2  ;;  %v389_v20 = vmul.f32 %v388_v15, %v966_v2  ;;  %v353_v22 = vmul.f32 %v352_v17, %v948_v51  ;;  %v417_v26 = vadd.f32 0.00028619796, %v416_v16 }
  0xc6   :  { %v429_v29 = vmul.f32 %v428_v23, %v972_v9  ;;  %v454_v30 = vmul.f32 %v984_v24, %v984_v24  ;;  %v342_v32 = vmul.f32 %v341_v21, %v948_v51 }
  0xc7   :  { %v390_v25 = vadd.f32 0.014752088, %v389_v20  ;;  %v354_v27 = vadd.f32 0.4994258, %v353_v22  ;;  %v379_v28 = vadd.f32 0.0036580483, %v378_v19  ;;  %v418_v37 = vmul.f32 %v417_v26, %v972_v9 }
  0xc8   :  { %v430_v34 = vadd.f32 0.014752088, %v429_v29  ;;  %v992_v35 = vmin.f32 %v454_v30, 16.0  ;;  %v343_v42 = vadd.f32 0.18741608, %v342_v32 }
  0xc9   :  { %v391_v31 = vmul.f32 %v390_v25, %v966_v2  ;;  %v355_v33 = vmul.f32 %v354_v27, %v948_v51  ;;  %v380_v39 = vmul.f32 %v379_v28, %v966_v2  ;;  %v419_v48 = vadd.f32 0.0036580483, %v418_v37 }
  0xca   :  { %v431_v40 = vmul.f32 %v430_v34, %v972_v9  ;;  %v456_v44 = vmul.f32 2.1237322e-06, %v992_v35  ;;  %v467_v46 = vmul.f32 3.8918573e-05, %v992_v35  ;;  %v344_v54 = vmul.f32 %v343_v42, %v948_v51 }
  0xcb   :  { %v392_v36 = vadd.f32 0.112945676, %v391_v31  ;;  %v356_v38 = vadd.f32 1.0, %v355_v33  ;;  %v381_v49 = vadd.f32 0.05243302, %v380_v39  ;;  %v420_v61 = vmul.f32 %v419_v48, %v972_v9 }
  0xcc   :  { %v432_v50 = vadd.f32 0.112945676, %v431_v40  ;;  %v457_v56 = vadd.f32 0.00028619796, %v456_v44  ;;  %v468_v59 = vadd.f32 0.001143296, %v467_v46 }
  0xcd   :  { %v393_v41 = vmul.f32 %v392_v36, %v966_v2  ;;  %774 = vrcp.f32 %v356_v38  ;;  %v382_v0 = vmul.f32 %v381_v49, %v966_v2  ;;  %v345_v5 = vadd.f32 1.1283791, %v344_v54 }
  0xce   :  { %v433_v55 = vmul.f32 %v432_v50, %v972_v9  ;;  %v469_v3 = vmul.f32 %v468_v59, %v992_v35  ;;  %v458_v6 = vmul.f32 %v457_v56, %v992_v35  ;;  %v421_v51 = vadd.f32 0.05243302, %v420_v61 }
  0xcf   :  { %v394_v47 = vadd.f32 0.4994258, %v393_v41  ;;  %v366_v11 = vand.u32 2147483647, %v356_v38  ;;  %v368_v12 = vand.u32 2147483648, %v356_v38  ;;  %vm362_vm1 = vweird.f32 %v356_v38 }
  0xd0   :  { %v434_v1 = vadd.f32 0.4994258, %v433_v55  ;;  %v470_v10 = vadd.f32 0.014752088, %v469_v3  ;;  %v383_v14 = vadd.f32 0.18741608, %v382_v0  ;;  %v346_v21 = vmul.f32 %v345_v5, %v944_v45 }
  0xd1   :  { %v395_v52 = vmul.f32 %v394_v47, %v966_v2  ;;  %v459_v18 = vadd.f32 0.0036580483, %v458_v6  ;;  %v369_v22 = vor.u32 1.1754944e-38, %v368_v12  ;;  %vm367_vm3 = vcmp.eq.f32.partialorder %v366_v11, 8.507059e+37 }
  0xd2   :  { %v435_v8 = vmul.f32 %v434_v1, %v972_v9  ;;  %v471_v17 = vmul.f32 %v470_v10, %v992_v35  ;;  %v384_v23 = vmul.f32 %v383_v14, %v966_v2  ;;  %v422_v27 = vmul.f32 %v421_v51, %v972_v9 }
  0xd3   :  { %v396_v60 = vadd.f32 1.0, %v395_v52  ;;  %v775_v63 = vpop.eup %774  ;;  %v460_v31 = vmul.f32 %v459_v18, %v992_v35  ;;  %v326_v3 = vmul.f32 0.5, %v941_v43 }
  0xd4   :  { %v358_v4 = vmul.f32 %v775_v63, %v356_v38  ;;  %vm363_vm0 = vweird.f32 %v775_v63  ;;  %v1008_v16 = vadd.f32 1.0, %v435_v8  ;;  %v472_v28 = vadd.f32 0.112945676, %v471_v17 }
  0xd5   :  { %776 = vrcp.f32 %v396_v60  ;;  %vm364_vm2 = vmor %vm362_vm1, %vm363_vm0  ;;  %v408_v33 = vand.u32 2147483648, %v396_v60  ;;  %v385_v36 = vadd.f32 1.1283791, %v384_v23  ;;  %v406_v37 = vand.u32 2147483647, %v396_v60 }
  0xd6   :  { %v359_v7 = vsub.f32 1.0, %v358_v4  ;;  %778 = vrcp.f32 %v1008_v16  ;;  %v473_v34 = vmul.f32 %v472_v28, %v992_v35  ;;  %v423_v2 = vadd.f32 0.18741608, %v422_v27 }
  0xd7   :  { %vm402_vm5 = vweird.f32 %v396_v60  ;;  %v461_v42 = vadd.f32 0.05243302, %v460_v31  ;;  %v409_v44 = vor.u32 1.1754944e-38, %v408_v33  ;;  %v386_v48 = vmul.f32 %v385_v36, %v957_v58 }
  0xd8   :  { %v360_v15 = vmul.f32 %v775_v63, %v359_v7  ;;  %v474_v39 = vadd.f32 0.4994258, %v473_v34  ;;  %vm407_vm7 = vcmp.eq.f32.partialorder %v406_v37, 8.507059e+37  ;;  %v424_v54 = vmul.f32 %v423_v2, %v972_v9 }
  0xd9   :  { %v448_v61 = vand.u32 2147483648, %v1008_v16  ;;  %vm442_vm9 = vweird.f32 %v1008_v16  ;;  %v446_v58 = vand.u32 2147483647, %v1008_v16  ;;  %v327_v9 = vmul.f32 0.5, %v950_v53 }
  0xda   :  { %v361_v20 = vadd.f32 %v775_v63, %v360_v15  ;;  %v475_v46 = vmul.f32 %v474_v39, %v992_v35  ;;  %v425_v4 = vadd.f32 1.1283791, %v424_v54  ;;  %v329_v36 = vmul.f32 0.5, %v976_v13 }
  0xdb   :  { %v777_v19 = vpop.eup %776  ;;  %v449_v51 = vor.u32 1.1754944e-38, %v448_v61  ;;  %vm447_vm11 = vcmp.eq.f32.partialorder %v446_v58, 8.507059e+37  ;;  %v558_v61 = vld [vmem:[#allocation7] sm:$0x3] }
  0xdc   :  { %v398_v25 = vmul.f32 %v777_v19, %v396_v60  ;;  %v365_v26 = vsel %vm364_vm2, %v775_v63, %v361_v20  ;;  %vm403_vm4 = vweird.f32 %v777_v19  ;;  %v779_v38 = vpop.eup %778  ;;  %v476_v55 = vadd.f32 1.0, %v475_v46 }
  0xdd   :  { %v370_v29 = vsel %vm367_vm3, %v369_v22, %v365_v26  ;;  %v438_v41 = vmul.f32 %v779_v38, %v1008_v16  ;;  %vm404_vm6 = vmor %vm402_vm5, %vm403_vm4  ;;  %vm443_vm8 = vweird.f32 %v779_v38  ;;  %v462_v60 = vmul.f32 %v461_v42, %v992_v35 }
  0xde   :  { %v399_v30 = vsub.f32 1.0, %v398_v25  ;;  %v371_v32 = vmul.f32 %v370_v29, %v346_v21  ;;  %780 = vrcp.f32 %v476_v55  ;;  %vm444_vm10 = vmor %vm442_vm9, %vm443_vm8  ;;  %v426_v14 = vmul.f32 %v425_v4, %v962_v62 }
  0xdf   :  { %v439_v50 = vsub.f32 1.0, %v438_v41  ;;  %v463_v6 = vadd.f32 0.18741608, %v462_v60  ;;  %v488_v20 = vand.u32 2147483648, %v476_v55  ;;  %v486_v62 = vand.u32 2147483647, %v476_v55 }
  0xe0   :  { %v400_v45 = vmul.f32 %v777_v19, %v399_v30  ;;  %v730_v47 = vclamps-f32 %v371_v32, 1.0  ;;  %vm482_vm13 = vweird.f32 %v476_v55  ;;  %v328_v32 = vmul.f32 0.5, %v954_v57 }
  0xe1   :  { %v440_v59 = vmul.f32 %v779_v38, %v439_v50  ;;  %v464_v15 = vmul.f32 %v463_v6, %v992_v35  ;;  %v489_v26 = vor.u32 1.1754944e-38, %v488_v20  ;;  %vm487_vm15 = vcmp.eq.f32.partialorder %v486_v62, 8.507059e+37 }
  0xe2   :  { %v401_v40 = vadd.f32 %v777_v19, %v400_v45  ;;  %v494_v63 = vadd.f32 1.0, %v730_v47  ;;  %v561_v6 = vperm.slane %v558_v61, 1 }
  0xe3   :  { %v441_v0 = vadd.f32 %v779_v38, %v440_v59  ;;  %v465_v22 = vadd.f32 1.1283791, %v464_v15 }
  0xe4   :  { %v405_v49 = vsel %vm404_vm6, %v777_v19, %v401_v40  ;;  %v1027_v8 = vmul.f32 %v494_v63, %v326_v3  ;;  %v781_v11 = vpop.eup %780  ;;  %v560_v3 = vperm.slane %v558_v61, 0 }
  0xe5   :  { %v410_v52 = vsel %vm407_vm7, %v409_v44, %v405_v49  ;;  %v445_v5 = vsel %vm444_vm10, %v779_v38, %v441_v0  ;;  %v478_v43 = vmul.f32 %v781_v11, %v476_v55  ;;  %vm483_vm12 = vweird.f32 %v781_v11 }
  0xe6   :  { %v411_v56 = vmul.f32 %v410_v52, %v386_v48  ;;  %v450_v12 = vsel %vm447_vm11, %v449_v51, %v445_v5  ;;  %v510_v16 = vmul.f32 %v1027_v8, %v1027_v8  ;;  %vm484_vm14 = vmor %vm482_vm13, %vm483_vm12  ;;  %v466_v27 = vmul.f32 %v465_v22, %v984_v24 }
  0xe7   :  { %v451_v18 = vmul.f32 %v450_v12, %v426_v14  ;;  %v479_v19 = vsub.f32 1.0, %v478_v43 }
  0xe8   :  { %v731_v1 = vclamps-f32 %v411_v56, 1.0 }
  0xe9   :  { %v480_v23 = vmul.f32 %v781_v11, %v479_v19  ;;  %v732_v35 = vclamps-f32 %v451_v18, 1.0 }
  0xea   :  { %v495_v7 = vadd.f32 1.0, %v731_v1  ;;  %v568_v1 = vld [vmem:[%s1069_s4] sm:$0x3]  ;;  %s895_s4 = smov [#allocation8]  }
  0xeb   :  { %v481_v25 = vadd.f32 %v781_v11, %v480_v23  ;;  %v496_v30 = vadd.f32 1.0, %v732_v35  ;;  %v571_v15 = vperm.slane %v568_v1, 1  ;;  %s586_s12 = sshll.u32 %s895_s4, 4  ;;  %s587_s12 = int_to_ptr.vmem [resolvable:$true] %s586_s12 }
  0xec   :  { %v1029_v10 = vmul.f32 %v495_v7, %v327_v9 }
  0xed   :  { %v485_v28 = vsel %vm484_vm14, %v781_v11, %v481_v25  ;;  %v1041_v34 = vmul.f32 %v496_v30, %v328_v32  ;;  %v570_v11 = vperm.slane %v568_v1, 0 }
  0xee   :  { %v502_v53 = vadd.f32 %v1029_v10, %v1027_v8  ;;  %v511_v17 = vmul.f32 %v1029_v10, %v1029_v10  ;;  %v490_v29 = vsel %vm487_vm15, %v489_v26, %v485_v28 }
  0xef   :  { %v491_v31 = vmul.f32 %v490_v29, %v466_v27  ;;  %v512_v24 = vmul.f32 %v1041_v34, %v1041_v34 }
  0xf0   :  { %503 = vadd.xlane.f32.xlu0 %v502_v53  ;;  %v514_v21 = vadd.f32 %v511_v17, %v510_v16 }
  0xf1   :  { %v733_v33 = vclamps-f32 %v491_v31, 1.0 }
  0xf2   :  { %515 = vadd.xlane.f32.xlu1 %v514_v21 }
  0xf3   :  { %v497_v45 = vadd.f32 1.0, %v733_v33 }
  0xf5   :  { %v1044_v37 = vmul.f32 %v497_v45, %v329_v36 }
  0xf7   :  { %v505_v38 = vadd.f32 %v1044_v37, %v1041_v34  ;;  %v513_v2 = vmul.f32 %v1044_v37, %v1044_v37 }
  0xf9   :  { %506 = vadd.xlane.f32.xlu0 %v505_v38  ;;  %v517_v39 = vadd.f32 %v513_v2, %v512_v24 }
  0xfb   :  { %518 = vadd.xlane.f32.xlu1 %v517_v39 }
 0x163   :  { %v504_v57 = vpop.xlane.xlu0 %503 }
 0x164   :  { %v508_v40 = vmul.f32 0.00390625, %v504_v57 }
 0x165   :  { %v516_v41 = vpop.xlane.xlu1 %515 }
 0x166   :  { %v522_v42 = vmul.f32 %v508_v40, %v508_v40  ;;  %v520_v13 = vmul.f32 0.00390625, %v516_v41  ;;  %v528_v4 = vsub.f32 %v1027_v8, %v508_v40  ;;  %v529_v5 = vsub.f32 %v1029_v10, %v508_v40 }
 0x168   :  { %v524_v44 = vsub.f32 %v520_v13, %v522_v42 }
 0x16a   :  { %v526_v46 = vmax.f32 %v524_v44, 0.0 }
 0x16c   :  { %v532_v47 = vadd.f32 1e-12, %v526_v46  ;;  %v507_v49 = vpop.xlane.xlu0 %506 }
 0x16d   :  { %v509_v52 = vmul.f32 0.00390625, %v507_v49 }
 0x16e   :  { %782 = vrsqrt.f32 %v532_v47  ;;  %v519_v54 = vpop.xlane.xlu1 %518  ;;  %vm540_vm1 = vweird.f32 %v532_v47 }
 0x16f   :  { %v521_v56 = vmul.f32 0.00390625, %v519_v54  ;;  %v523_v59 = vmul.f32 %v509_v52, %v509_v52  ;;  %v530_v22 = vsub.f32 %v1041_v34, %v509_v52  ;;  %v531_v23 = vsub.f32 %v1044_v37, %v509_v52 }
 0x171   :  { %v525_v63 = vsub.f32 %v521_v56, %v523_v59 }
 0x173   :  { %v527_v58 = vmax.f32 %v525_v63, 0.0 }
 0x174   :  { %v783_v48 = vpop.eup %782 }
 0x175   :  { %v535_v50 = vmul.f32 %v783_v48, %v532_v47  ;;  %vm541_vm0 = vweird.f32 %v783_v48  ;;  %v533_v7 = vadd.f32 1e-12, %v527_v58 }
 0x176   :  { %vm542_vm2 = vmor %vm540_vm1, %vm541_vm0 }
 0x177   :  { %v536_v55 = vmul.f32 %v783_v48, %v535_v50  ;;  %784 = vrsqrt.f32 %v533_v7  ;;  %vm550_vm4 = vweird.f32 %v533_v7 }
 0x179   :  { %v537_v60 = vmul.f32 0.5, %v536_v55 }
 0x17b   :  { %v538_v0 = vsub.f32 1.5, %v537_v60 }
 0x17d   :  { %v539_v9 = vmul.f32 %v783_v48, %v538_v0  ;;  %v785_v18 = vpop.eup %784 }
 0x17e   :  { %v545_v19 = vmul.f32 %v785_v18, %v533_v7  ;;  %vm551_vm3 = vweird.f32 %v785_v18 }
 0x17f   :  { %v543_v51 = vsel %vm542_vm2, %v783_v48, %v539_v9  ;;  %vm552_vm5 = vmor %vm550_vm4, %vm551_vm3 }
 0x180   :  { %v554_v12 = vmul.f32 %v543_v51, %v528_v4  ;;  %v555_v14 = vmul.f32 %v543_v51, %v529_v5  ;;  %v546_v8 = vmul.f32 %v785_v18, %v545_v19 }
 0x182   :  { %v564_v43 = vmul.f32 %v560_v3, %v554_v12  ;;  %v565_v53 = vmul.f32 %v561_v6, %v555_v14  ;;  %v547_v20 = vmul.f32 0.5, %v546_v8 }
 0x184   :  { %v574_v16 = vadd.f32 %v570_v11, %v564_v43  ;;  %v575_v17 = vadd.f32 %v571_v15, %v565_v53  ;;  %v548_v10 = vsub.f32 1.5, %v547_v20 }
 0x186   :  { %578 = vst [vmem:[#allocation8] sm:$0xff] %v574_v16  ;;  %v549_v21 = vmul.f32 %v785_v18, %v548_v10 }
 0x187   :  { %579 = vst [vmem:[#allocation8 + $0x8] sm:$0xff] %v575_v17 }
 0x188   :  { %v553_v62 = vsel %vm552_vm5, %v785_v18, %v549_v21 }
 0x189   :  { %v556_v35 = vmul.f32 %v553_v62, %v530_v22  ;;  %v557_v25 = vmul.f32 %v553_v62, %v531_v23 }
 0x18b   :  { %v566_v26 = vmul.f32 %v560_v3, %v556_v35  ;;  %v567_v27 = vmul.f32 %v561_v6, %v557_v25 }
 0x18d   :  { %v576_v28 = vadd.f32 %v570_v11, %v566_v26  ;;  %v577_v29 = vadd.f32 %v571_v15, %v567_v27 }
 0x18f   :  { %580 = vst [vmem:[#allocation8 + $0x10] sm:$0xff] %v576_v28 }
 0x190   :  { %581 = vst [vmem:[#allocation8 + $0x18] sm:$0xff] %v577_v29 }
 0x191   :  { %594 = dma.vmem_to_hbm [thread:$0]  %s587_s12, 512, %s589_s15, [#allocation4], %s892_s30, %s892_s30, %s893_s6  }
 0x192   :  { %886 = dma.done.wait [#allocation4], 512  }
 0x193   :  { %887 = vsyncadd [#allocation4], 4294966784 }
 0x194   :  { %599 = vsyncpa [#allocation3], 1 }
 0x195   :  { %600 = vsyncpa [#allocation6], 1 }
 0x196   :  { %601 = vsyncpa [#allocation4], 1 }

</bundles_post_ra>
